<compile_context>
chip_gen: v5e
topology: v5e:2x2
jax: 0.10.0
libtpu: 0.0.40
codegen_flags: <defaults>
</compile_context>

<pallas_src>
import functools
import math

import jax
import jax.numpy as jnp
from jax.experimental import pallas as pl
from jax.experimental.pallas import tpu as pltpu


def _gem_kernel(p_ref, x_ref, o_ref, *, eps, log_hw):
    # p_ref : SMEM scalar-prefetch ref, shape (1,), float32  (the GeM exponent)
    # x_ref : VMEM tile, shape (block_rows, H*W)
    # o_ref : VMEM tile, shape (block_rows, 1)
    p = p_ref[0]
    inv_p = 1.0 / p                                   # scalar, once per tile
    x = x_ref[...].astype(jnp.float32)
    x = jnp.maximum(x, eps)                           # clamp(min=eps)  (>0)
    # x ** p with a runtime (non-integer) exponent: exp(p * log(x)); x > 0.
    xp = jnp.exp(p * jnp.log(x))
    s = jnp.sum(xp, axis=-1, keepdims=True)           # row sum over H*W
    # mean ** (1/p) = exp((log(sum) - log(HW)) / p); sum > 0 since xp > 0.
    o_ref[...] = jnp.exp((jnp.log(s) - log_hw) * inv_p).astype(o_ref.dtype)


def _round_up(v, m):
    return -(-v // m) * m


def gem_pallas(x, p, eps=1e-6, block_rows=None):
    """GeM pooling. x: (N, C, H, W), p: (1,) float32. Returns (N, C, 1, 1)."""
    N, C, H, W = x.shape
    NC = N * C
    HW = H * W
    x2 = x.reshape(NC, HW)

    itemsize = jnp.dtype(x.dtype).itemsize
    # Sublane packing multiple: 8 rows for f32, 16 for bf16, 32 for int8.
    row_mult = max(8, 32 // itemsize)

    if block_rows is None:
        # Lane dim of the VMEM tile pads to a multiple of 128.
        hw_pad = _round_up(HW, 128)
        # Cap the double-buffered input footprint at ~24 MiB so the tile also
        # fits comfortably on v7x (64 MiB physical VMEM), per perf review.
        input_budget = 24 * 1024 * 1024
        br = input_budget // (2 * hw_pad * itemsize)
        br = min(br, 8192)                       # diminishing returns beyond this
        br = max(row_mult, (br // row_mult) * row_mult)
        br = min(br, _round_up(NC, row_mult))    # don't exceed the problem size
        block_rows = br
    else:
        block_rows = max(row_mult, _round_up(block_rows, row_mult))

    grid = (pl.cdiv(NC, block_rows),)

    # Explicit VMEM budget: 2x input buffers + 2x (lane-padded) output buffers
    # + slack.  Kept <= 48 MiB so it stays inside v7x's 64 MiB physical VMEM.
    hw_pad = _round_up(HW, 128)
    vmem_bytes = (2 * block_rows * hw_pad * itemsize
                  + 2 * block_rows * 128 * itemsize
                  + (4 << 20))
    vmem_limit = int(min(max(vmem_bytes, 16 << 20), 48 << 20))

    out = pl.pallas_call(
        functools.partial(_gem_kernel, eps=eps, log_hw=math.log(HW)),
        out_shape=jax.ShapeDtypeStruct((NC, 1), x.dtype),
        grid_spec=pltpu.PrefetchScalarGridSpec(
            num_scalar_prefetch=1,                # p lands in SMEM
            grid=grid,
            in_specs=[pl.BlockSpec((block_rows, HW), lambda i, p_ref: (i, 0))],
            out_specs=pl.BlockSpec((block_rows, 1), lambda i, p_ref: (i, 0)),
        ),
        compiler_params=pltpu.CompilerParams(
            dimension_semantics=("parallel",),
            vmem_limit_bytes=vmem_limit),
    )(p.astype(jnp.float32), x2)

    return out.reshape(N, C, 1, 1)


def gem_reference(x, p, eps=1e-6):
    """Pure-JAX reference matching the PyTorch module."""
    xc = jnp.maximum(x.astype(jnp.float32), eps) ** p[0]
    m = jnp.mean(xc, axis=(-2, -1), keepdims=True)
    return (m ** (1.0 / p[0])).astype(x.dtype)


if __name__ == "__main__":
    key = jax.random.PRNGKey(0)
    N, C, H, W = 2, 4, 16, 16
    x = jax.random.uniform(key, (N, C, H, W), dtype=jnp.float32)

    # Deterministic parameter init, as in GeM.__init__: p = ones(1) * 3
    p = jnp.ones((1,), dtype=jnp.float32) * 3.0
    eps = 1e-6

    y = gem_pallas(x, p, eps=eps)
    y = jax.block_until_ready(y)

    y_ref = gem_reference(x, p, eps=eps)
    assert y.shape == (N, C, 1, 1)
    assert jnp.allclose(y, y_ref, rtol=1e-5, atol=1e-5), (
        f"max abs err = {jnp.max(jnp.abs(y - y_ref))}")

    # Exercise a larger, non-divisible NC with small HW (typical GeM: 7x7)
    # to check the cdiv / ragged-last-block path and the big-tile config.
    x2 = jax.random.uniform(jax.random.PRNGKey(1), (3, 37, 7, 7),
                            dtype=jnp.float32)
    y2 = jax.block_until_ready(gem_pallas(x2, p, eps=eps))
    y2_ref = gem_reference(x2, p, eps=eps)
    assert y2.shape == (3, 37, 1, 1)
    assert jnp.allclose(y2, y2_ref, rtol=1e-5, atol=1e-5), (
        f"max abs err = {jnp.max(jnp.abs(y2 - y2_ref))}")

    print("KERNEL_OK")
</pallas_src>

<mosaic_0001>
module attributes {stable_mosaic.version = 11 : i64} {
  func.func @_gem_kernel(%arg0: i32, %arg1: memref<1xf32, #tpu.memory_space<smem>>, %arg2: memref<8x256xf32, #tpu.memory_space<vmem>>, %arg3: memref<8x1xf32, #tpu.memory_space<vmem>>) attributes {dimension_semantics = [#tpu.dimension_semantics<parallel>], iteration_bounds = array<i64: 1>, scalar_prefetch = 1 : i64, scratch_operands = 0 : i64, tpu.core_type = #tpu.core_type<tc>, window_params = [{transform_indices = @transform_0, window_bounds = array<i64: 8, 256>}, {transform_indices = @transform_1, window_bounds = array<i64: 8, 1>}]} {
    %c0 = arith.constant 0 : index
    %0 = memref.load %arg1[%c0] : memref<1xf32, #tpu.memory_space<smem>>
    %cst = arith.constant 1.000000e+00 : f32
    %1 = arith.divf %cst, %0 : f32
    %c0_0 = arith.constant 0 : index
    %c0_1 = arith.constant 0 : index
    %2 = vector.load %arg2[%c0_0, %c0_1] : memref<8x256xf32, #tpu.memory_space<vmem>>, vector<8x256xf32>
    %cst_2 = arith.constant 9.99999997E-7 : f32
    %3 = vector.broadcast %cst_2 : f32 to vector<8x256xf32>
    %4 = arith.maximumf %2, %3 : vector<8x256xf32>
    %5 = math.log %4 : vector<8x256xf32>
    %6 = vector.broadcast %0 : f32 to vector<8x256xf32>
    %7 = arith.mulf %6, %5 : vector<8x256xf32>
    %8 = math.exp %7 : vector<8x256xf32>
    %cst_3 = arith.constant dense<0.000000e+00> : vector<8xf32>
    %9 = vector.multi_reduction <add>, %8, %cst_3 [1] : vector<8x256xf32> to vector<8xf32>
    %10 = vector.shape_cast %9 : vector<8xf32> to vector<8x1xf32>
    %11 = math.log %10 : vector<8x1xf32>
    %cst_4 = arith.constant 5.54517746 : f32
    %12 = vector.broadcast %cst_4 : f32 to vector<8x1xf32>
    %13 = arith.subf %11, %12 : vector<8x1xf32>
    %14 = vector.broadcast %1 : f32 to vector<8x1xf32>
    %15 = arith.mulf %13, %14 : vector<8x1xf32>
    %16 = math.exp %15 : vector<8x1xf32>
    %c0_5 = arith.constant 0 : index
    %c0_6 = arith.constant 0 : index
    %17 = vector.load %arg3[%c0_5, %c0_6] : memref<8x1xf32, #tpu.memory_space<vmem>>, vector<8x1xf32>
    tpu.vector_store %arg3[%c0_5, %c0_6], %16 {strides = array<i32>} : memref<8x1xf32, #tpu.memory_space<vmem>>, vector<8x1xf32>,
    return
  }
  func.func @transform_0(%arg0: i32, %arg1: memref<1xf32, #tpu.memory_space<smem>>) -> (i32, i32) {
    %c0_i32 = arith.constant 0 : i32
    %c0_i32_0 = arith.constant 0 : i32
    return %arg0, %c0_i32 : i32, i32
  }
  func.func @transform_1(%arg0: i32, %arg1: memref<1xf32, #tpu.memory_space<smem>>) -> (i32, i32) {
    %c0_i32 = arith.constant 0 : i32
    %c0_i32_0 = arith.constant 0 : i32
    return %arg0, %c0_i32 : i32, i32
  }
}

</mosaic_0001>

<bundles_post_ra>
// kernel: tpu_custom_call.1
= control target key start
LH: loop header
LB: loop body
LE: loop exit
PB: predicated region body
PF: predicated region fallthrough
CT: control target
= control target key end

     0   :  { %8 = vsyncpa [#allocation5], 0  ;;  %s117_s12 = smov [#allocation4]   ;;  %s142_s0 = inlined_call_operand.<no memory space> [shape: f32[1], index: 0, kind: input, shape index: {}]   ;;  %s143_s1 = inlined_call_operand.hbm [shape: f32[8,256], index: 1, kind: input, shape index: {}]   ;;  %s144_s2 = inlined_call_operand.vmem [shape: f32[8,1], index: 2, kind: output, shape index: {}]  }
   0x1   :  { %s14_s11 = sshll.u32 %s143_s1, 4  ;;  %s16_s13 = sshll.u32 %s117_s12, 4  ;;  %s15_s11 = int_to_ptr.hbm [resolvable:$true] %s14_s11  ;;  %s17_s13 = int_to_ptr.vmem [resolvable:$true] %s16_s13 }
   0x2   :  { %19 = dma.hbm_to_vmem [thread:$0]  %s15_s11, 256, %s17_s13, [#allocation5]  }
   0x3   :  { %115 = dma.done.wait [#allocation5], 256  }
   0x4   :  { %116 = vsyncadd [#allocation5], 4294967040  ;;  %v25_v0 = vstv %s142_s0  ;;  %v41_v2 = vld [vmem:[#allocation4] sm:$0xff]  ;;  %v42_v3 = vld [vmem:[#allocation4 + $0x8] sm:$0xff]  ;;  %vm66_vm4 = vcmask 7168  }
   0x5   :  { %77 = vrcp.f32 %v25_v0  ;;  %v43_v4 = vmax.f32 %v41_v2, 1e-06  ;;  %v44_v5 = vmax.f32 %v42_v3, 1e-06  ;;  %vm31_vm0 = vweird.f32 %v25_v0 }
   0x6   :  { %v37_v7 = vand.u32 2147483648, %v25_v0  ;;  %v35_v9 = vand.u32 2147483647, %v25_v0 }
   0x7   :  { %79 = vlog2.f32 %v43_v4 }
   0x8   :  { %81 = vlog2.f32 %v44_v5  ;;  %v38_v11 = vor.u32 1.1754944e-38, %v37_v7  ;;  %vm36_vm3 = vcmp.eq.f32.partialorder %v35_v9, 8.507059e+37 }
   0xb   :  { %v78_v1 = vpop.eup %77 }
   0xc   :  { %v27_v6 = vmul.f32 %v78_v1, %v25_v0  ;;  %vm32_vm1 = vweird.f32 %v78_v1 }
   0xd   :  { %vm33_vm2 = vmor %vm31_vm0, %vm32_vm1  ;;  %v80_v13 = vpop.eup %79 }
   0xe   :  { %v28_v8 = vsub.f32 1.0, %v27_v6  ;;  %v82_v15 = vpop.eup %81  ;;  %v46_v16 = vmul.f32 0.6931472, %v80_v13 }
   0xf   :  { %v48_v18 = vmul.f32 0.6931472, %v82_v15 }
  0x10   :  { %v29_v10 = vmul.f32 %v78_v1, %v28_v8  ;;  %v50_v19 = vmul.f32 %v46_v16, %v25_v0 }
  0x11   :  { %v51_v20 = vmul.f32 %v48_v18, %v25_v0 }
  0x12   :  { %v30_v12 = vadd.f32 %v78_v1, %v29_v10  ;;  %v52_v21 = vmul.f32 1.442695, %v50_v19 }
  0x13   :  { %v54_v22 = vmul.f32 1.442695, %v51_v20 }
  0x14   :  { %v34_v14 = vsel %vm33_vm2, %v78_v1, %v30_v12  ;;  %83 = vpow2.f32 %v52_v21 }
  0x15   :  { %v39_v17 = vsel %vm36_vm3, %v38_v11, %v34_v14  ;;  %85 = vpow2.f32 %v54_v22 }
  0x16   :  { %74 = vpush %v39_v17 }
  0x1a   :  { %v84_v23 = vpop.eup %83 }
  0x1b   :  { %v86_v24 = vpop.eup %85 }
  0x1c   :  { %v56_v25 = vadd.f32 %v86_v24, %v84_v23 }
  0x1e   :  { %57 = vadd.xlane.f32.xlu0 %v56_v25 }
  0x47   :  { %s75_s0 = spop %74 }
  0x48   :  { %v62_v29 = vstv %s75_s0 }
  0x91   :  { %v58_v26 = vpop.xlane.xlu0 %57 }
  0x92   :  { %87 = vlog2.f32 %v58_v26 }
  0x98   :  { %v88_v27 = vpop.eup %87 }
  0x99   :  { %v60_v28 = vmul.f32 0.6931472, %v88_v27 }
  0x9b   :  { %v73_v30 = vadd.f32 -5.5451775, %v60_v28 }
  0x9d   :  { %v63_v31 = vmul.f32 %v73_v30, %v62_v29 }
  0x9f   :  { %v64_v32 = vmul.f32 1.442695, %v63_v31 }
  0xa1   :  { %89 = vpow2.f32 %v64_v32 }
  0xa7   :  { %v90_v33 = vpop.eup %89 }
  0xa8   :  { %67 = vst.msk [vmem:[%s144_s2] sm:$0xff] %vm66_vm4, %v90_v33 }
  0xa9   :  { %72 = vsyncpa [#allocation5], 1 }

</bundles_post_ra>
